<compile_context>
chip_gen: v7x
topology: tpu7x:2x2x1
jax: 0.10.0
libtpu: 0.0.40
codegen_flags: <defaults>
</compile_context>

<pallas_src>
import numpy as np
import jax
import jax.numpy as jnp
from jax import lax
from jax.experimental import pallas as pl
from jax.experimental.pallas import tpu as pltpu


def _lin_kernel(x0_ref, at_ref, a2_ref, w_in_ref, ud_ref,   # inputs
                x_out_ref, y_out_ref,                        # outputs
                c_ref, ca_ref, y_ref):                       # scratch
    T, batch, nx = x_out_ref.shape
    bp = x0_ref.shape[0]                      # padded batch (multiple of 8)

    # ---- Phase 1: all input-driven terms via lane-filling matmuls ----------
    #   C  = [U | D] @ [B^T ; E^T]   (T*bp, nx), f32 accumulation
    #   CA = C @ A^T                 (consumed by the time-blocked step)
    c = jnp.dot(ud_ref[...], w_in_ref[...], preferred_element_type=jnp.float32)
    c_ref[...] = c
    ca_ref[...] = jnp.dot(c, at_ref[...], preferred_element_type=jnp.float32)

    a_t = at_ref[...]                         # f32 (nx, nx) = A^T
    a2 = a2_ref[...]                          # f32 (nx, nx) = (A^T)^2

    # Hoisted lane-select mask for Y[t] = X[t][:, -1].
    lane = lax.broadcasted_iota(jnp.int32, (bp, nx), 1)
    last_lane = lane == (nx - 1)

    def emit(t, x_f32):
        # X[t]: drop padded batch rows.  Y[t]: last lane of the f32 state.
        x_out_ref[t] = x_f32[:batch, :].astype(x_out_ref.dtype)
        y_ref[t] = jnp.sum(jnp.where(last_lane, x_f32, 0.0),
                           axis=-1, keepdims=True)

    # ---- Phase 2: serial recurrence, time-blocked by 2, state in vregs -----
    n_blk = T // 2

    def step(k, x):
        t0 = 2 * k
        base0 = pl.multiple_of(t0 * bp, bp)
        base1 = pl.multiple_of(t0 * bp + bp, bp)
        c0 = c_ref[pl.ds(base0, bp), :]
        c1 = c_ref[pl.ds(base1, bp), :]
        ca0 = ca_ref[pl.ds(base0, bp), :]
        # Off the serial chain: x_{t0+1} depends only on the carried x.
        x1 = jnp.dot(x, a_t, preferred_element_type=jnp.float32) + c0
        # On the serial chain: x_{t0+2} via (A^T)^2 -> half the chained matmuls.
        x2 = jnp.dot(x, a2, preferred_element_type=jnp.float32) + (ca0 + c1)
        emit(t0, x1)
        emit(t0 + 1, x2)
        return x2

    x = x0_ref[...]                           # f32 state carried in vregs
    x = lax.fori_loop(0, n_blk, step, x, unroll=max(1, min(n_blk, 8)))

    if T % 2 == 1:                            # static (trace-time) tail step
        t_last = T - 1
        c_last = c_ref[pl.ds(t_last * bp, bp), :]
        x = jnp.dot(x, a_t, preferred_element_type=jnp.float32) + c_last
        emit(t_last, x)

    # ---- Phase 3: assemble Y from the tiny per-step scratch ----------------
    y_all = jnp.sum(y_ref[...], axis=-1)      # (T, bp), batch now in lanes
    y_out_ref[...] = y_all[:, :batch].astype(y_out_ref.dtype)


def _padded_bytes(shape, dtype):
    """Rough VMEM footprint of one buffer with (sublane, lane) tile padding."""
    itemsize = np.dtype(dtype).itemsize
    s = list(shape)
    if len(s) >= 1:
        s[-1] = -(-s[-1] // 128) * 128
    if len(s) >= 2:
        sub = max(8, 32 // itemsize)
        s[-2] = -(-s[-2] // sub) * sub
    n = 1
    for d in s:
        n *= d
    return n * itemsize


def lin_forward(x0, U, D, A_w, B_w, E_w, compute_dtype=jnp.bfloat16):
    """x0: (batch, nx); U: (T, batch, nu); D: (T, batch, nd).
    A_w/B_w/E_w are PyTorch-convention (out_features, in_features) weights.
    compute_dtype is used ONLY for the input-driven (Phase-1) matmul; the
    recurrence operands and all accumulation are f32."""
    T, batch, nu = U.shape
    _, _, nd = D.shape
    _, nx = x0.shape
    bp = ((batch + 7) // 8) * 8               # sublane-aligned batch
    pad_b = bp - batch

    # Weight prep: A^T and (A^T)^2 in f32; fused input weights in compute_dtype.
    A_t = A_w.T.astype(jnp.float32)                                       # (nx, nx)
    A2 = jnp.dot(A_t, A_t, precision=jax.lax.Precision.HIGHEST)           # (nx, nx)
    A2 = A2.astype(jnp.float32)
    W_in = jnp.concatenate([B_w.T, E_w.T], axis=0).astype(compute_dtype)  # (nu+nd, nx)

    # Inputs: pad batch to bp, flatten (T, bp) -> one MXU-filling M dimension.
    x0_p = jnp.pad(x0.astype(jnp.float32), ((0, pad_b), (0, 0)))          # (bp, nx)
    U_p = jnp.pad(U, ((0, 0), (0, pad_b), (0, 0)))
    D_p = jnp.pad(D, ((0, 0), (0, pad_b), (0, 0)))
    UD = jnp.concatenate([U_p, D_p], axis=-1).reshape(T * bp, nu + nd)
    UD = UD.astype(compute_dtype)                                         # (T*bp, nu+nd)

    # VMEM budget from the actual buffers (in/out double-buffered by default,
    # scratch single-buffered), with 2x headroom, capped v7x-safe.
    buf_bytes = (
        2 * (_padded_bytes((bp, nx), jnp.float32)
             + 2 * _padded_bytes((nx, nx), jnp.float32)
             + _padded_bytes((nu + nd, nx), compute_dtype)
             + _padded_bytes((T * bp, nu + nd), compute_dtype)
             + _padded_bytes((T, batch, nx), x0.dtype)
             + _padded_bytes((T, batch), x0.dtype))
        + 2 * _padded_bytes((T * bp, nx), jnp.float32)
        + _padded_bytes((T, bp, 1), jnp.float32)
    )
    vmem_limit = int(min(64 * 1024 * 1024, max(4 * 1024 * 1024, 2 * buf_bytes)))

    X, Y = pl.pallas_call(
        _lin_kernel,
        out_shape=(jax.ShapeDtypeStruct((T, batch, nx), x0.dtype),
                   jax.ShapeDtypeStruct((T, batch), x0.dtype)),
        grid_spec=pltpu.PrefetchScalarGridSpec(
            num_scalar_prefetch=0,
            grid=(1,),   # single grid step: whole problem resident in VMEM
            in_specs=[
                pl.BlockSpec((bp, nx), lambda i: (0, 0)),              # x0 (padded)
                pl.BlockSpec((nx, nx), lambda i: (0, 0)),              # A^T   (f32)
                pl.BlockSpec((nx, nx), lambda i: (0, 0)),              # (A^T)^2
                pl.BlockSpec((nu + nd, nx), lambda i: (0, 0)),         # [B^T; E^T]
                pl.BlockSpec((T * bp, nu + nd), lambda i: (0, 0)),     # [U | D]
            ],
            out_specs=[
                pl.BlockSpec((T, batch, nx), lambda i: (0, 0, 0)),     # X (one DMA)
                pl.BlockSpec((T, batch), lambda i: (0, 0)),            # Y
            ],
            scratch_shapes=[
                pltpu.VMEM((T * bp, nx), jnp.float32),   # C   (input-driven terms)
                pltpu.VMEM((T * bp, nx), jnp.float32),   # C @ A^T
                pltpu.VMEM((T, bp, 1), jnp.float32),     # per-step Y columns (f32)
            ],
        ),
        compiler_params=pltpu.CompilerParams(
            dimension_semantics=("arbitrary",),  # serial recurrence: nothing parallel
            vmem_limit_bytes=vmem_limit,
        ),
    )(x0_p, A_t, A2, W_in, UD)

    return X, Y


def lin_forward_ref(x0, U, D, A_w, B_w, E_w):
    """Pure-JAX f32 reference matching the PyTorch loop."""
    def step(x, ud):
        u, d = ud
        x = x @ A_w.T + u @ B_w.T + d @ E_w.T
        return x, x
    _, X = jax.lax.scan(step, x0, (U, D))
    return X, X[:, :, -1]


if __name__ == "__main__":
    # Small shapes consistent with the module: T=8 steps, batch=2.
    T, batch, nx, nu, nd = 8, 2, 32, 8, 4

    key = jax.random.PRNGKey(0)
    k_x, k_u, k_d, k_a, k_b, k_e = jax.random.split(key, 6)

    x0 = jax.random.normal(k_x, (batch, nx), dtype=jnp.float32)
    U = jax.random.normal(k_u, (T, batch, nu), dtype=jnp.float32)
    D = jax.random.normal(k_d, (T, batch, nd), dtype=jnp.float32)

    # Deterministic "Linear" weights, PyTorch (out_features, in_features) convention.
    A_w = jax.random.uniform(k_a, (nx, nx), jnp.float32, -0.1, 0.1)
    B_w = jax.random.uniform(k_b, (nx, nu), jnp.float32, -0.1, 0.1)
    E_w = jax.random.uniform(k_e, (nx, nd), jnp.float32, -0.1, 0.1)

    X_ref, Y_ref = lin_forward_ref(x0, U, D, A_w, B_w, E_w)

    # f32 operands everywhere: tight parity with the f32 reference.
    X32, Y32 = lin_forward(x0, U, D, A_w, B_w, E_w, compute_dtype=jnp.float32)
    X32 = jax.block_until_ready(X32)
    Y32 = jax.block_until_ready(Y32)
    assert X32.shape == (T, batch, nx) and Y32.shape == (T, batch)
    assert jnp.allclose(X32, X_ref, atol=1e-3, rtol=1e-3)
    assert jnp.allclose(Y32, Y_ref, atol=1e-3, rtol=1e-3)

    # Default path: bf16 operands for the Phase-1 input matmul only; the
    # recurrence stays f32 so error does not compound over T.
    X, Y = lin_forward(x0, U, D, A_w, B_w, E_w)
    X = jax.block_until_ready(X)
    Y = jax.block_until_ready(Y)
    assert X.shape == (T, batch, nx) and Y.shape == (T, batch)
    assert jnp.allclose(X, X_ref, atol=5e-2, rtol=5e-2)
    assert jnp.allclose(Y, Y_ref, atol=5e-2, rtol=5e-2)

    print("KERNEL_OK")
</pallas_src>

<mosaic_0001>
module attributes {stable_mosaic.version = 11 : i64} {
  func.func @_lin_kernel(%arg0: i32, %arg1: memref<8x32xf32, #tpu.memory_space<vmem>>, %arg2: memref<32x32xf32, #tpu.memory_space<vmem>>, %arg3: memref<32x32xf32, #tpu.memory_space<vmem>>, %arg4: memref<12x32xf32, #tpu.memory_space<vmem>>, %arg5: memref<64x12xf32, #tpu.memory_space<vmem>>, %arg6: memref<8x2x32xf32, #tpu.memory_space<vmem>>, %arg7: memref<8x2xf32, #tpu.memory_space<vmem>>, %arg8: memref<64x32xf32, #tpu.memory_space<vmem>>, %arg9: memref<64x32xf32, #tpu.memory_space<vmem>>, %arg10: memref<8x8x1xf32, #tpu.memory_space<vmem>>) attributes {dimension_semantics = [#tpu.dimension_semantics<arbitrary>], iteration_bounds = array<i64: 1>, scalar_prefetch = 0 : i64, scratch_operands = 3 : i64, tpu.core_type = #tpu.core_type<tc>, window_params = [{pipeline_mode = #tpu.pipeline_mode<synchronous>, transform_indices = @transform_0, window_bounds = array<i64: 8, 32>}, {pipeline_mode = #tpu.pipeline_mode<synchronous>, transform_indices = @transform_1, window_bounds = array<i64: 32, 32>}, {pipeline_mode = #tpu.pipeline_mode<synchronous>, transform_indices = @transform_2, window_bounds = array<i64: 32, 32>}, {pipeline_mode = #tpu.pipeline_mode<synchronous>, transform_indices = @transform_3, window_bounds = array<i64: 12, 32>}, {pipeline_mode = #tpu.pipeline_mode<synchronous>, transform_indices = @transform_4, window_bounds = array<i64: 64, 12>}, {pipeline_mode = #tpu.pipeline_mode<synchronous>, transform_indices = @transform_5, window_bounds = array<i64: 8, 2, 32>}, {pipeline_mode = #tpu.pipeline_mode<synchronous>, transform_indices = @transform_6, window_bounds = array<i64: 8, 2>}]} {
    %c0 = arith.constant 0 : index
    %c0_0 = arith.constant 0 : index
    %0 = vector.load %arg5[%c0, %c0_0] : memref<64x12xf32, #tpu.memory_space<vmem>>, vector<64x12xf32>
    %c0_1 = arith.constant 0 : index
    %c0_2 = arith.constant 0 : index
    %1 = vector.load %arg4[%c0_1, %c0_2] : memref<12x32xf32, #tpu.memory_space<vmem>>, vector<12x32xf32>
    %cst = arith.constant dense<0.000000e+00> : vector<64x32xf32>
    %2 = tpu.matmul %0, %1, %cst {dimension_numbers = #tpu.dot_dimension_numbers<[1], [0], [0], [1], [0, 0, 1, 1], [], []>} : vector<64x12xf32>, vector<12x32xf32>, vector<64x32xf32> -> vector<64x32xf32>
    %c0_3 = arith.constant 0 : index
    %c0_4 = arith.constant 0 : index
    %3 = vector.load %arg8[%c0_3, %c0_4] : memref<64x32xf32, #tpu.memory_space<vmem>>, vector<64x32xf32>
    tpu.vector_store %arg8[%c0_3, %c0_4], %2 {strides = array<i32>} : memref<64x32xf32, #tpu.memory_space<vmem>>, vector<64x32xf32>,
    %c0_5 = arith.constant 0 : index
    %c0_6 = arith.constant 0 : index
    %4 = vector.load %arg2[%c0_5, %c0_6] : memref<32x32xf32, #tpu.memory_space<vmem>>, vector<32x32xf32>
    %cst_7 = arith.constant dense<0.000000e+00> : vector<64x32xf32>
    %5 = tpu.matmul %2, %4, %cst_7 {dimension_numbers = #tpu.dot_dimension_numbers<[1], [0], [0], [1], [0, 0, 1, 1], [], []>} : vector<64x32xf32>, vector<32x32xf32>, vector<64x32xf32> -> vector<64x32xf32>
    %c0_8 = arith.constant 0 : index
    %c0_9 = arith.constant 0 : index
    %6 = vector.load %arg9[%c0_8, %c0_9] : memref<64x32xf32, #tpu.memory_space<vmem>>, vector<64x32xf32>
    tpu.vector_store %arg9[%c0_8, %c0_9], %5 {strides = array<i32>} : memref<64x32xf32, #tpu.memory_space<vmem>>, vector<64x32xf32>,
    %c0_10 = arith.constant 0 : index
    %c0_11 = arith.constant 0 : index
    %7 = vector.load %arg2[%c0_10, %c0_11] : memref<32x32xf32, #tpu.memory_space<vmem>>, vector<32x32xf32>
    %c0_12 = arith.constant 0 : index
    %c0_13 = arith.constant 0 : index
    %8 = vector.load %arg3[%c0_12, %c0_13] : memref<32x32xf32, #tpu.memory_space<vmem>>, vector<32x32xf32>
    %9 = tpu.iota {dimensions = array<i32: 1>} : vector<8x32xi32>
    %c31_i32 = arith.constant 31 : i32
    %10 = vector.broadcast %c31_i32 : i32 to vector<8x32xi32>
    %11 = arith.cmpi eq, %9, %10 : vector<8x32xi32>
    %c0_14 = arith.constant 0 : index
    %c0_15 = arith.constant 0 : index
    %12 = vector.load %arg1[%c0_14, %c0_15] : memref<8x32xf32, #tpu.memory_space<vmem>>, vector<8x32xf32>
    %c0_i32 = arith.constant 0 : i32
    %c2_i32 = arith.constant 2 : i32
    %13 = arith.muli %c2_i32, %c0_i32 : i32
    %c8_i32 = arith.constant 8 : i32
    %14 = arith.muli %13, %c8_i32 : i32
    %15 = tpu.assume_multiple %14, 8 : i32
    %c8_i32_16 = arith.constant 8 : i32
    %16 = arith.muli %13, %c8_i32_16 : i32
    %c8_i32_17 = arith.constant 8 : i32
    %17 = arith.addi %16, %c8_i32_17 : i32
    %18 = tpu.assume_multiple %17, 8 : i32
    %19 = arith.index_cast %15 : i32 to index
    %c0_18 = arith.constant 0 : index
    %20 = vector.load %arg8[%19, %c0_18] : memref<64x32xf32, #tpu.memory_space<vmem>>, vector<8x32xf32>
    %21 = arith.index_cast %18 : i32 to index
    %c0_19 = arith.constant 0 : index
    %22 = vector.load %arg8[%21, %c0_19] : memref<64x32xf32, #tpu.memory_space<vmem>>, vector<8x32xf32>
    %23 = arith.index_cast %15 : i32 to index
    %c0_20 = arith.constant 0 : index
    %24 = vector.load %arg9[%23, %c0_20] : memref<64x32xf32, #tpu.memory_space<vmem>>, vector<8x32xf32>
    %cst_21 = arith.constant dense<0.000000e+00> : vector<8x32xf32>
    %25 = tpu.matmul %12, %7, %cst_21 {dimension_numbers = #tpu.dot_dimension_numbers<[1], [0], [0], [1], [0, 0, 1, 1], [], []>} : vector<8x32xf32>, vector<32x32xf32>, vector<8x32xf32> -> vector<8x32xf32>
    %26 = arith.addf %25, %20 : vector<8x32xf32>
    %cst_22 = arith.constant dense<0.000000e+00> : vector<8x32xf32>
    %27 = tpu.matmul %12, %8, %cst_22 {dimension_numbers = #tpu.dot_dimension_numbers<[1], [0], [0], [1], [0, 0, 1, 1], [], []>} : vector<8x32xf32>, vector<32x32xf32>, vector<8x32xf32> -> vector<8x32xf32>
    %28 = arith.addf %24, %22 : vector<8x32xf32>
    %29 = arith.addf %27, %28 : vector<8x32xf32>
    %30 = vector.extract_strided_slice %26 {offsets = [0, 0], sizes = [2, 32], strides = [1, 1]} : vector<8x32xf32> to vector<2x32xf32>
    %31 = arith.index_cast %13 : i32 to index
    %c0_23 = arith.constant 0 : index
    %c0_24 = arith.constant 0 : index
    %32 = vector.load %arg6[%31, %c0_23, %c0_24] : memref<8x2x32xf32, #tpu.memory_space<vmem>>, vector<1x2x32xf32>
    %33 = vector.shape_cast %32 : vector<1x2x32xf32> to vector<2x32xf32>
    %34 = vector.shape_cast %30 : vector<2x32xf32> to vector<1x2x32xf32>
    tpu.vector_store %arg6[%31, %c0_23, %c0_24], %34 {strides = array<i32>} : memref<8x2x32xf32, #tpu.memory_space<vmem>>, vector<1x2x32xf32>,
    %cst_25 = arith.constant 0.000000e+00 : f32
    %35 = vector.broadcast %cst_25 : f32 to vector<8x32xf32>
    %36 = arith.select %11, %26, %35 : vector<8x32xi1>, vector<8x32xf32>
    %cst_26 = arith.constant dense<0.000000e+00> : vector<8xf32>
    %37 = vector.multi_reduction <add>, %36, %cst_26 [1] : vector<8x32xf32> to vector<8xf32>
    %38 = vector.shape_cast %37 : vector<8xf32> to vector<8x1xf32>
    %39 = arith.index_cast %13 : i32 to index
    %c0_27 = arith.constant 0 : index
    %c0_28 = arith.constant 0 : index
    %40 = vector.load %arg10[%39, %c0_27, %c0_28] : memref<8x8x1xf32, #tpu.memory_space<vmem>>, vector<1x8x1xf32>
    %41 = vector.shape_cast %40 : vector<1x8x1xf32> to vector<8x1xf32>
    %42 = vector.shape_cast %38 : vector<8x1xf32> to vector<1x8x1xf32>
    tpu.vector_store %arg10[%39, %c0_27, %c0_28], %42 {strides = array<i32>} : memref<8x8x1xf32, #tpu.memory_space<vmem>>, vector<1x8x1xf32>,
    %c1_i32 = arith.constant 1 : i32
    %43 = arith.addi %13, %c1_i32 : i32
    %44 = vector.extract_strided_slice %29 {offsets = [0, 0], sizes = [2, 32], strides = [1, 1]} : vector<8x32xf32> to vector<2x32xf32>
    %45 = arith.index_cast %43 : i32 to index
    %c0_29 = arith.constant 0 : index
    %c0_30 = arith.constant 0 : index
    %46 = vector.load %arg6[%45, %c0_29, %c0_30] : memref<8x2x32xf32, #tpu.memory_space<vmem>>, vector<1x2x32xf32>
    %47 = vector.shape_cast %46 : vector<1x2x32xf32> to vector<2x32xf32>
    %48 = vector.shape_cast %44 : vector<2x32xf32> to vector<1x2x32xf32>
    tpu.vector_store %arg6[%45, %c0_29, %c0_30], %48 {strides = array<i32>} : memref<8x2x32xf32, #tpu.memory_space<vmem>>, vector<1x2x32xf32>,
    %cst_31 = arith.constant 0.000000e+00 : f32
    %49 = vector.broadcast %cst_31 : f32 to vector<8x32xf32>
    %50 = arith.select %11, %29, %49 : vector<8x32xi1>, vector<8x32xf32>
    %cst_32 = arith.constant dense<0.000000e+00> : vector<8xf32>
    %51 = vector.multi_reduction <add>, %50, %cst_32 [1] : vector<8x32xf32> to vector<8xf32>
    %52 = vector.shape_cast %51 : vector<8xf32> to vector<8x1xf32>
    %53 = arith.index_cast %43 : i32 to index
    %c0_33 = arith.constant 0 : index
    %c0_34 = arith.constant 0 : index
    %54 = vector.load %arg10[%53, %c0_33, %c0_34] : memref<8x8x1xf32, #tpu.memory_space<vmem>>, vector<1x8x1xf32>
    %55 = vector.shape_cast %54 : vector<1x8x1xf32> to vector<8x1xf32>
    %56 = vector.shape_cast %52 : vector<8x1xf32> to vector<1x8x1xf32>
    tpu.vector_store %arg10[%53, %c0_33, %c0_34], %56 {strides = array<i32>} : memref<8x8x1xf32, #tpu.memory_space<vmem>>, vector<1x8x1xf32>,
    %c1_i32_35 = arith.constant 1 : i32
    %c2_i32_36 = arith.constant 2 : i32
    %57 = arith.muli %c2_i32_36, %c1_i32_35 : i32
    %c8_i32_37 = arith.constant 8 : i32
    %58 = arith.muli %57, %c8_i32_37 : i32
    %59 = tpu.assume_multiple %58, 8 : i32
    %c8_i32_38 = arith.constant 8 : i32
    %60 = arith.muli %57, %c8_i32_38 : i32
    %c8_i32_39 = arith.constant 8 : i32
    %61 = arith.addi %60, %c8_i32_39 : i32
    %62 = tpu.assume_multiple %61, 8 : i32
    %63 = arith.index_cast %59 : i32 to index
    %c0_40 = arith.constant 0 : index
    %64 = vector.load %arg8[%63, %c0_40] : memref<64x32xf32, #tpu.memory_space<vmem>>, vector<8x32xf32>
    %65 = arith.index_cast %62 : i32 to index
    %c0_41 = arith.constant 0 : index
    %66 = vector.load %arg8[%65, %c0_41] : memref<64x32xf32, #tpu.memory_space<vmem>>, vector<8x32xf32>
    %67 = arith.index_cast %59 : i32 to index
    %c0_42 = arith.constant 0 : index
    %68 = vector.load %arg9[%67, %c0_42] : memref<64x32xf32, #tpu.memory_space<vmem>>, vector<8x32xf32>
    %cst_43 = arith.constant dense<0.000000e+00> : vector<8x32xf32>
    %69 = tpu.matmul %29, %7, %cst_43 {dimension_numbers = #tpu.dot_dimension_numbers<[1], [0], [0], [1], [0, 0, 1, 1], [], []>} : vector<8x32xf32>, vector<32x32xf32>, vector<8x32xf32> -> vector<8x32xf32>
    %70 = arith.addf %69, %64 : vector<8x32xf32>
    %cst_44 = arith.constant dense<0.000000e+00> : vector<8x32xf32>
    %71 = tpu.matmul %29, %8, %cst_44 {dimension_numbers = #tpu.dot_dimension_numbers<[1], [0], [0], [1], [0, 0, 1, 1], [], []>} : vector<8x32xf32>, vector<32x32xf32>, vector<8x32xf32> -> vector<8x32xf32>
    %72 = arith.addf %68, %66 : vector<8x32xf32>
    %73 = arith.addf %71, %72 : vector<8x32xf32>
    %74 = vector.extract_strided_slice %70 {offsets = [0, 0], sizes = [2, 32], strides = [1, 1]} : vector<8x32xf32> to vector<2x32xf32>
    %75 = arith.index_cast %57 : i32 to index
    %c0_45 = arith.constant 0 : index
    %c0_46 = arith.constant 0 : index
    %76 = vector.load %arg6[%75, %c0_45, %c0_46] : memref<8x2x32xf32, #tpu.memory_space<vmem>>, vector<1x2x32xf32>
    %77 = vector.shape_cast %76 : vector<1x2x32xf32> to vector<2x32xf32>
    %78 = vector.shape_cast %74 : vector<2x32xf32> to vector<1x2x32xf32>
    tpu.vector_store %arg6[%75, %c0_45, %c0_46], %78 {strides = array<i32>} : memref<8x2x32xf32, #tpu.memory_space<vmem>>, vector<1x2x32xf32>,
    %cst_47 = arith.constant 0.000000e+00 : f32
    %79 = vector.broadcast %cst_47 : f32 to vector<8x32xf32>
    %80 = arith.select %11, %70, %79 : vector<8x32xi1>, vector<8x32xf32>
    %cst_48 = arith.constant dense<0.000000e+00> : vector<8xf32>
    %81 = vector.multi_reduction <add>, %80, %cst_48 [1] : vector<8x32xf32> to vector<8xf32>
    %82 = vector.shape_cast %81 : vector<8xf32> to vector<8x1xf32>
    %83 = arith.index_cast %57 : i32 to index
    %c0_49 = arith.constant 0 : index
    %c0_50 = arith.constant 0 : index
    %84 = vector.load %arg10[%83, %c0_49, %c0_50] : memref<8x8x1xf32, #tpu.memory_space<vmem>>, vector<1x8x1xf32>
    %85 = vector.shape_cast %84 : vector<1x8x1xf32> to vector<8x1xf32>
    %86 = vector.shape_cast %82 : vector<8x1xf32> to vector<1x8x1xf32>
    tpu.vector_store %arg10[%83, %c0_49, %c0_50], %86 {strides = array<i32>} : memref<8x8x1xf32, #tpu.memory_space<vmem>>, vector<1x8x1xf32>,
    %c1_i32_51 = arith.constant 1 : i32
    %87 = arith.addi %57, %c1_i32_51 : i32
    %88 = vector.extract_strided_slice %73 {offsets = [0, 0], sizes = [2, 32], strides = [1, 1]} : vector<8x32xf32> to vector<2x32xf32>
    %89 = arith.index_cast %87 : i32 to index
    %c0_52 = arith.constant 0 : index
    %c0_53 = arith.constant 0 : index
    %90 = vector.load %arg6[%89, %c0_52, %c0_53] : memref<8x2x32xf32, #tpu.memory_space<vmem>>, vector<1x2x32xf32>
    %91 = vector.shape_cast %90 : vector<1x2x32xf32> to vector<2x32xf32>
    %92 = vector.shape_cast %88 : vector<2x32xf32> to vector<1x2x32xf32>
    tpu.vector_store %arg6[%89, %c0_52, %c0_53], %92 {strides = array<i32>} : memref<8x2x32xf32, #tpu.memory_space<vmem>>, vector<1x2x32xf32>,
    %cst_54 = arith.constant 0.000000e+00 : f32
    %93 = vector.broadcast %cst_54 : f32 to vector<8x32xf32>
    %94 = arith.select %11, %73, %93 : vector<8x32xi1>, vector<8x32xf32>
    %cst_55 = arith.constant dense<0.000000e+00> : vector<8xf32>
    %95 = vector.multi_reduction <add>, %94, %cst_55 [1] : vector<8x32xf32> to vector<8xf32>
    %96 = vector.shape_cast %95 : vector<8xf32> to vector<8x1xf32>
    %97 = arith.index_cast %87 : i32 to index
    %c0_56 = arith.constant 0 : index
    %c0_57 = arith.constant 0 : index
    %98 = vector.load %arg10[%97, %c0_56, %c0_57] : memref<8x8x1xf32, #tpu.memory_space<vmem>>, vector<1x8x1xf32>
    %99 = vector.shape_cast %98 : vector<1x8x1xf32> to vector<8x1xf32>
    %100 = vector.shape_cast %96 : vector<8x1xf32> to vector<1x8x1xf32>
    tpu.vector_store %arg10[%97, %c0_56, %c0_57], %100 {strides = array<i32>} : memref<8x8x1xf32, #tpu.memory_space<vmem>>, vector<1x8x1xf32>,
    %c2_i32_58 = arith.constant 2 : i32
    %c2_i32_59 = arith.constant 2 : i32
    %101 = arith.muli %c2_i32_59, %c2_i32_58 : i32
    %c8_i32_60 = arith.constant 8 : i32
    %102 = arith.muli %101, %c8_i32_60 : i32
    %103 = tpu.assume_multiple %102, 8 : i32
    %c8_i32_61 = arith.constant 8 : i32
    %104 = arith.muli %101, %c8_i32_61 : i32
    %c8_i32_62 = arith.constant 8 : i32
    %105 = arith.addi %104, %c8_i32_62 : i32
    %106 = tpu.assume_multiple %105, 8 : i32
    %107 = arith.index_cast %103 : i32 to index
    %c0_63 = arith.constant 0 : index
    %108 = vector.load %arg8[%107, %c0_63] : memref<64x32xf32, #tpu.memory_space<vmem>>, vector<8x32xf32>
    %109 = arith.index_cast %106 : i32 to index
    %c0_64 = arith.constant 0 : index
    %110 = vector.load %arg8[%109, %c0_64] : memref<64x32xf32, #tpu.memory_space<vmem>>, vector<8x32xf32>
    %111 = arith.index_cast %103 : i32 to index
    %c0_65 = arith.constant 0 : index
    %112 = vector.load %arg9[%111, %c0_65] : memref<64x32xf32, #tpu.memory_space<vmem>>, vector<8x32xf32>
    %cst_66 = arith.constant dense<0.000000e+00> : vector<8x32xf32>
    %113 = tpu.matmul %73, %7, %cst_66 {dimension_numbers = #tpu.dot_dimension_numbers<[1], [0], [0], [1], [0, 0, 1, 1], [], []>} : vector<8x32xf32>, vector<32x32xf32>, vector<8x32xf32> -> vector<8x32xf32>
    %114 = arith.addf %113, %108 : vector<8x32xf32>
    %cst_67 = arith.constant dense<0.000000e+00> : vector<8x32xf32>
    %115 = tpu.matmul %73, %8, %cst_67 {dimension_numbers = #tpu.dot_dimension_numbers<[1], [0], [0], [1], [0, 0, 1, 1], [], []>} : vector<8x32xf32>, vector<32x32xf32>, vector<8x32xf32> -> vector<8x32xf32>
    %116 = arith.addf %112, %110 : vector<8x32xf32>
    %117 = arith.addf %115, %116 : vector<8x32xf32>
    %118 = vector.extract_strided_slice %114 {offsets = [0, 0], sizes = [2, 32], strides = [1, 1]} : vector<8x32xf32> to vector<2x32xf32>
    %119 = arith.index_cast %101 : i32 to index
    %c0_68 = arith.constant 0 : index
    %c0_69 = arith.constant 0 : index
    %120 = vector.load %arg6[%119, %c0_68, %c0_69] : memref<8x2x32xf32, #tpu.memory_space<vmem>>, vector<1x2x32xf32>
    %121 = vector.shape_cast %120 : vector<1x2x32xf32> to vector<2x32xf32>
    %122 = vector.shape_cast %118 : vector<2x32xf32> to vector<1x2x32xf32>
    tpu.vector_store %arg6[%119, %c0_68, %c0_69], %122 {strides = array<i32>} : memref<8x2x32xf32, #tpu.memory_space<vmem>>, vector<1x2x32xf32>,
    %cst_70 = arith.constant 0.000000e+00 : f32
    %123 = vector.broadcast %cst_70 : f32 to vector<8x32xf32>
    %124 = arith.select %11, %114, %123 : vector<8x32xi1>, vector<8x32xf32>
    %cst_71 = arith.constant dense<0.000000e+00> : vector<8xf32>
    %125 = vector.multi_reduction <add>, %124, %cst_71 [1] : vector<8x32xf32> to vector<8xf32>
    %126 = vector.shape_cast %125 : vector<8xf32> to vector<8x1xf32>
    %127 = arith.index_cast %101 : i32 to index
    %c0_72 = arith.constant 0 : index
    %c0_73 = arith.constant 0 : index
    %128 = vector.load %arg10[%127, %c0_72, %c0_73] : memref<8x8x1xf32, #tpu.memory_space<vmem>>, vector<1x8x1xf32>
    %129 = vector.shape_cast %128 : vector<1x8x1xf32> to vector<8x1xf32>
    %130 = vector.shape_cast %126 : vector<8x1xf32> to vector<1x8x1xf32>
    tpu.vector_store %arg10[%127, %c0_72, %c0_73], %130 {strides = array<i32>} : memref<8x8x1xf32, #tpu.memory_space<vmem>>, vector<1x8x1xf32>,
    %c1_i32_74 = arith.constant 1 : i32
    %131 = arith.addi %101, %c1_i32_74 : i32
    %132 = vector.extract_strided_slice %117 {offsets = [0, 0], sizes = [2, 32], strides = [1, 1]} : vector<8x32xf32> to vector<2x32xf32>
    %133 = arith.index_cast %131 : i32 to index
    %c0_75 = arith.constant 0 : index
    %c0_76 = arith.constant 0 : index
    %134 = vector.load %arg6[%133, %c0_75, %c0_76] : memref<8x2x32xf32, #tpu.memory_space<vmem>>, vector<1x2x32xf32>
    %135 = vector.shape_cast %134 : vector<1x2x32xf32> to vector<2x32xf32>
    %136 = vector.shape_cast %132 : vector<2x32xf32> to vector<1x2x32xf32>
    tpu.vector_store %arg6[%133, %c0_75, %c0_76], %136 {strides = array<i32>} : memref<8x2x32xf32, #tpu.memory_space<vmem>>, vector<1x2x32xf32>,
    %cst_77 = arith.constant 0.000000e+00 : f32
    %137 = vector.broadcast %cst_77 : f32 to vector<8x32xf32>
    %138 = arith.select %11, %117, %137 : vector<8x32xi1>, vector<8x32xf32>
    %cst_78 = arith.constant dense<0.000000e+00> : vector<8xf32>
    %139 = vector.multi_reduction <add>, %138, %cst_78 [1] : vector<8x32xf32> to vector<8xf32>
    %140 = vector.shape_cast %139 : vector<8xf32> to vector<8x1xf32>
    %141 = arith.index_cast %131 : i32 to index
    %c0_79 = arith.constant 0 : index
    %c0_80 = arith.constant 0 : index
    %142 = vector.load %arg10[%141, %c0_79, %c0_80] : memref<8x8x1xf32, #tpu.memory_space<vmem>>, vector<1x8x1xf32>
    %143 = vector.shape_cast %142 : vector<1x8x1xf32> to vector<8x1xf32>
    %144 = vector.shape_cast %140 : vector<8x1xf32> to vector<1x8x1xf32>
    tpu.vector_store %arg10[%141, %c0_79, %c0_80], %144 {strides = array<i32>} : memref<8x8x1xf32, #tpu.memory_space<vmem>>, vector<1x8x1xf32>,
    %c3_i32 = arith.constant 3 : i32
    %c2_i32_81 = arith.constant 2 : i32
    %145 = arith.muli %c2_i32_81, %c3_i32 : i32
    %c8_i32_82 = arith.constant 8 : i32
    %146 = arith.muli %145, %c8_i32_82 : i32
    %147 = tpu.assume_multiple %146, 8 : i32
    %c8_i32_83 = arith.constant 8 : i32
    %148 = arith.muli %145, %c8_i32_83 : i32
    %c8_i32_84 = arith.constant 8 : i32
    %149 = arith.addi %148, %c8_i32_84 : i32
    %150 = tpu.assume_multiple %149, 8 : i32
    %151 = arith.index_cast %147 : i32 to index
    %c0_85 = arith.constant 0 : index
    %152 = vector.load %arg8[%151, %c0_85] : memref<64x32xf32, #tpu.memory_space<vmem>>, vector<8x32xf32>
    %153 = arith.index_cast %150 : i32 to index
    %c0_86 = arith.constant 0 : index
    %154 = vector.load %arg8[%153, %c0_86] : memref<64x32xf32, #tpu.memory_space<vmem>>, vector<8x32xf32>
    %155 = arith.index_cast %147 : i32 to index
    %c0_87 = arith.constant 0 : index
    %156 = vector.load %arg9[%155, %c0_87] : memref<64x32xf32, #tpu.memory_space<vmem>>, vector<8x32xf32>
    %cst_88 = arith.constant dense<0.000000e+00> : vector<8x32xf32>
    %157 = tpu.matmul %117, %7, %cst_88 {dimension_numbers = #tpu.dot_dimension_numbers<[1], [0], [0], [1], [0, 0, 1, 1], [], []>} : vector<8x32xf32>, vector<32x32xf32>, vector<8x32xf32> -> vector<8x32xf32>
    %158 = arith.addf %157, %152 : vector<8x32xf32>
    %cst_89 = arith.constant dense<0.000000e+00> : vector<8x32xf32>
    %159 = tpu.matmul %117, %8, %cst_89 {dimension_numbers = #tpu.dot_dimension_numbers<[1], [0], [0], [1], [0, 0, 1, 1], [], []>} : vector<8x32xf32>, vector<32x32xf32>, vector<8x32xf32> -> vector<8x32xf32>
    %160 = arith.addf %156, %154 : vector<8x32xf32>
    %161 = arith.addf %159, %160 : vector<8x32xf32>
    %162 = vector.extract_strided_slice %158 {offsets = [0, 0], sizes = [2, 32], strides = [1, 1]} : vector<8x32xf32> to vector<2x32xf32>
    %163 = arith.index_cast %145 : i32 to index
    %c0_90 = arith.constant 0 : index
    %c0_91 = arith.constant 0 : index
    %164 = vector.load %arg6[%163, %c0_90, %c0_91] : memref<8x2x32xf32, #tpu.memory_space<vmem>>, vector<1x2x32xf32>
    %165 = vector.shape_cast %164 : vector<1x2x32xf32> to vector<2x32xf32>
    %166 = vector.shape_cast %162 : vector<2x32xf32> to vector<1x2x32xf32>
    tpu.vector_store %arg6[%163, %c0_90, %c0_91], %166 {strides = array<i32>} : memref<8x2x32xf32, #tpu.memory_space<vmem>>, vector<1x2x32xf32>,
    %cst_92 = arith.constant 0.000000e+00 : f32
    %167 = vector.broadcast %cst_92 : f32 to vector<8x32xf32>
    %168 = arith.select %11, %158, %167 : vector<8x32xi1>, vector<8x32xf32>
    %cst_93 = arith.constant dense<0.000000e+00> : vector<8xf32>
    %169 = vector.multi_reduction <add>, %168, %cst_93 [1] : vector<8x32xf32> to vector<8xf32>
    %170 = vector.shape_cast %169 : vector<8xf32> to vector<8x1xf32>
    %171 = arith.index_cast %145 : i32 to index
    %c0_94 = arith.constant 0 : index
    %c0_95 = arith.constant 0 : index
    %172 = vector.load %arg10[%171, %c0_94, %c0_95] : memref<8x8x1xf32, #tpu.memory_space<vmem>>, vector<1x8x1xf32>
    %173 = vector.shape_cast %172 : vector<1x8x1xf32> to vector<8x1xf32>
    %174 = vector.shape_cast %170 : vector<8x1xf32> to vector<1x8x1xf32>
    tpu.vector_store %arg10[%171, %c0_94, %c0_95], %174 {strides = array<i32>} : memref<8x8x1xf32, #tpu.memory_space<vmem>>, vector<1x8x1xf32>,
    %c1_i32_96 = arith.constant 1 : i32
    %175 = arith.addi %145, %c1_i32_96 : i32
    %176 = vector.extract_strided_slice %161 {offsets = [0, 0], sizes = [2, 32], strides = [1, 1]} : vector<8x32xf32> to vector<2x32xf32>
    %177 = arith.index_cast %175 : i32 to index
    %c0_97 = arith.constant 0 : index
    %c0_98 = arith.constant 0 : index
    %178 = vector.load %arg6[%177, %c0_97, %c0_98] : memref<8x2x32xf32, #tpu.memory_space<vmem>>, vector<1x2x32xf32>
    %179 = vector.shape_cast %178 : vector<1x2x32xf32> to vector<2x32xf32>
    %180 = vector.shape_cast %176 : vector<2x32xf32> to vector<1x2x32xf32>
    tpu.vector_store %arg6[%177, %c0_97, %c0_98], %180 {strides = array<i32>} : memref<8x2x32xf32, #tpu.memory_space<vmem>>, vector<1x2x32xf32>,
    %cst_99 = arith.constant 0.000000e+00 : f32
    %181 = vector.broadcast %cst_99 : f32 to vector<8x32xf32>
    %182 = arith.select %11, %161, %181 : vector<8x32xi1>, vector<8x32xf32>
    %cst_100 = arith.constant dense<0.000000e+00> : vector<8xf32>
    %183 = vector.multi_reduction <add>, %182, %cst_100 [1] : vector<8x32xf32> to vector<8xf32>
    %184 = vector.shape_cast %183 : vector<8xf32> to vector<8x1xf32>
    %185 = arith.index_cast %175 : i32 to index
    %c0_101 = arith.constant 0 : index
    %c0_102 = arith.constant 0 : index
    %186 = vector.load %arg10[%185, %c0_101, %c0_102] : memref<8x8x1xf32, #tpu.memory_space<vmem>>, vector<1x8x1xf32>
    %187 = vector.shape_cast %186 : vector<1x8x1xf32> to vector<8x1xf32>
    %188 = vector.shape_cast %184 : vector<8x1xf32> to vector<1x8x1xf32>
    tpu.vector_store %arg10[%185, %c0_101, %c0_102], %188 {strides = array<i32>} : memref<8x8x1xf32, #tpu.memory_space<vmem>>, vector<1x8x1xf32>,
    %c4_i32 = arith.constant 4 : i32
    %c0_103 = arith.constant 0 : index
    %c0_104 = arith.constant 0 : index
    %c0_105 = arith.constant 0 : index
    %189 = vector.load %arg10[%c0_103, %c0_104, %c0_105] : memref<8x8x1xf32, #tpu.memory_space<vmem>>, vector<8x8x1xf32>
    %cst_106 = arith.constant dense<0.000000e+00> : vector<8x8xf32>
    %190 = vector.multi_reduction <add>, %189, %cst_106 [2] : vector<8x8x1xf32> to vector<8x8xf32>
    %191 = vector.extract_strided_slice %190 {offsets = [0, 0], sizes = [8, 2], strides = [1, 1]} : vector<8x8xf32> to vector<8x2xf32>
    %c0_107 = arith.constant 0 : index
    %c0_108 = arith.constant 0 : index
    %192 = vector.load %arg7[%c0_107, %c0_108] : memref<8x2xf32, #tpu.memory_space<vmem>>, vector<8x2xf32>
    tpu.vector_store %arg7[%c0_107, %c0_108], %191 {strides = array<i32>} : memref<8x2xf32, #tpu.memory_space<vmem>>, vector<8x2xf32>,
    return
  }
  func.func @transform_0(%arg0: i32) -> (i32, i32) {
    %c0_i32 = arith.constant 0 : i32
    %c0_i32_0 = arith.constant 0 : i32
    %c0_i32_1 = arith.constant 0 : i32
    return %c0_i32, %c0_i32_0 : i32, i32
  }
  func.func @transform_1(%arg0: i32) -> (i32, i32) {
    %c0_i32 = arith.constant 0 : i32
    %c0_i32_0 = arith.constant 0 : i32
    %c0_i32_1 = arith.constant 0 : i32
    return %c0_i32, %c0_i32_0 : i32, i32
  }
  func.func @transform_2(%arg0: i32) -> (i32, i32) {
    %c0_i32 = arith.constant 0 : i32
    %c0_i32_0 = arith.constant 0 : i32
    %c0_i32_1 = arith.constant 0 : i32
    return %c0_i32, %c0_i32_0 : i32, i32
  }
  func.func @transform_3(%arg0: i32) -> (i32, i32) {
    %c0_i32 = arith.constant 0 : i32
    %c0_i32_0 = arith.constant 0 : i32
    %c0_i32_1 = arith.constant 0 : i32
    return %c0_i32, %c0_i32_0 : i32, i32
  }
  func.func @transform_4(%arg0: i32) -> (i32, i32) {
    %c0_i32 = arith.constant 0 : i32
    %c0_i32_0 = arith.constant 0 : i32
    %c0_i32_1 = arith.constant 0 : i32
    return %c0_i32, %c0_i32_0 : i32, i32
  }
  func.func @transform_5(%arg0: i32) -> (i32, i32, i32) {
    %c0_i32 = arith.constant 0 : i32
    %c0_i32_0 = arith.constant 0 : i32
    %c0_i32_1 = arith.constant 0 : i32
    %c0_i32_2 = arith.constant 0 : i32
    return %c0_i32, %c0_i32_0, %c0_i32_1 : i32, i32, i32
  }
  func.func @transform_6(%arg0: i32) -> (i32, i32) {
    %c0_i32 = arith.constant 0 : i32
    %c0_i32_0 = arith.constant 0 : i32
    %c0_i32_1 = arith.constant 0 : i32
    return %c0_i32, %c0_i32_0 : i32, i32
  }
}

</mosaic_0001>

<bundles_post_ra>
// kernel: tpu_custom_call.1
= control target key start
LH: loop header
LB: loop body
LE: loop exit
PB: predicated region body
PF: predicated region fallthrough
CT: control target
= control target key end

     0   :  { %12 = vsyncpa [#allocation6], 0  ;;  %s1728_s0 = inlined_call_operand.hbm [shape: f32[8,32], index: 0, kind: input, shape index: {}]   ;;  %s1729_s1 = inlined_call_operand.vmem [shape: f32[32,32], index: 1, kind: input, shape index: {}]   ;;  %s1730_s2 = inlined_call_operand.vmem [shape: f32[32,32], index: 2, kind: input, shape index: {}]   ;;  %s1731_s3 = inlined_call_operand.vmem [shape: f32[12,32], index: 3, kind: input, shape index: {}]   ;;  %s1732_s4 = inlined_call_operand.vmem [shape: f32[64,12], index: 4, kind: input, shape index: {}]   ;;  %s1733_s5 = inlined_call_operand.hbm [shape: f32[8,2,32], index: 5, kind: output, shape index: {0}]   ;;  %s1734_s6 = inlined_call_operand.vmem [shape: f32[8,2], index: 6, kind: output, shape index: {1}]  }
   0x1   :  { %13 = vsyncpa [#allocation7], 0  ;;  %s1453_s21 = smov [#allocation5]   ;;  %s1405_s25 = scalar_lea.hbm %s1728_s0, 128 }
   0x2   :  { %s20_s22 = sshll.u32 %s1453_s21, 4  ;;  %p1406_p0 = scmp.ne.s32.totalorder %s1728_s0, %s1405_s25  ;;  %s21_s22 = int_to_ptr.vmem [resolvable:$true] %s20_s22 }
   0x3   :  { %p1409_p1 = scmp.lt.u32.totalorder %s1405_s25, %s1728_s0 }
   0x5   :  { %p1411_p2 = pnand %p1409_p1, %p1406_p0 }
   0x7   :  { %1414 = shalt.err (!%p1411_p2)
}
   0x8   :  { %s1415_s30 = scalar_lea.vmem %s21_s22, 128  ;;  %p1420_p4 = scmp.lt.s32.totalorder %s21_s22, %s21_s22 }
   0x9   :  { %p1416_p3 = scmp.ne.s32.totalorder %s21_s22, %s1415_s30  ;;  %p1421_p5 = scmp.lt.s32.totalorder %s1415_s30, %s1415_s30 }
   0xb   :  { %p1422_p6 = por %p1421_p5, %p1420_p4 }
   0xd   :  { %p1423_p7 = pnand %p1422_p6, %p1416_p3 }
   0xf   :  { %1426 = shalt.err (!%p1423_p7)
}
  0x10   :  { %23 = dma.hbm_to_vmem [thread:$0]  %s1728_s0, 128, %s21_s22, [#allocation6]  }
  0x11   :  { %1449 = dma.done.wait [#allocation6], 128  }
  0x12   :  { %1450 = vsyncadd [#allocation6], 4294967168  ;;  %vm70_vm0 = vcmask 1043456   ;;  %vm45_vm1 = vcmask 97280   ;;  %vm1454_vm2 = vmmov 1   ;;  %v43_v0 = vld [vmem:[%s1731_s3] sm:$0xff]  ;;  %v337_v20 = vlaneseq }
  0x13   :  { %vm1333_vm3 = vmpackc.low %vm70_vm0, %vm1454_vm2  ;;  %v44_v1 = vld [vmem:[%s1731_s3 + $0x8] sm:$0xf]  ;;  %v35_v2 = vld [vmem:[%s1732_s4] sm:$0xff]  ;;  %v1455_v11 = vmov 0.0|0.0   ;;  %vm1456_vm4 = vmmov 0   ;;  %v1457_v18 = vmov 0.0  }
  0x14   :  { %v1332_v3 = vpack.c.bf16 %v44_v1, %v43_v0  ;;  %1212 = vmatprep.mubr.msk.f32.mxu0 %vm45_vm1, %v35_v2  ;;  %v329_v4 = vld [vmem:[%s1729_s1] sm:$0xff]  ;;  %v330_v5 = vld [vmem:[%s1729_s1 + $0x8] sm:$0xff]  ;;  %v331_v8 = vld [vmem:[%s1729_s1 + $0x10] sm:$0xff]  ;;  %vm179_vm5 = vcmask 261120   ;;  %v1582_v21 = vand.u32 127, %v337_v20  ;;  %v1052_v22 = vshrl.u32 %v337_v20, 7 }
  0x15   :  { %v36_v6 = vld [vmem:[%s1732_s4 + $0x8] sm:$0xff]  ;;  %v1528_v7 = vpack.c.bf16 %v330_v5, %v329_v4  ;;  %v332_v9 = vld [vmem:[%s1729_s1 + $0x18] sm:$0xff]  ;;  %v37_v10 = vld [vmem:[%s1732_s4 + $0x10] sm:$0xff]  ;;  %vm489_vm6 = vcmask 254976   ;;  %vm495_vm8 = vcmask 7168  }
  0x16   :  { %1334 = vmatprep.subr.msk.bf16.mxu0 %vm1333_vm3, %v1332_v3  ;;  %v1542_v12 = vpack.c.bf16 %v332_v9, %v331_v8  ;;  %v38_v13 = vld [vmem:[%s1732_s4 + $0x18] sm:$0xff]  ;;  %v39_v14 = vld [vmem:[%s1732_s4 + $0x20] sm:$0xff]  ;;  %v40_v15 = vld [vmem:[%s1732_s4 + $0x28] sm:$0xff]  ;;  %v1585_v23 = vsub.s32 %v1582_v21, %v1052_v22  ;;  %vm339_vm7 = vcmp.eq.s32.totalorder %v1582_v21, 31 }
  0x17   :  { %1337 = vmatpush3.bf16.msk.msra.mxu0 %vm1333_vm3, %v1332_v3  ;;  %1339 = vmatprep.subr.bf16.mxu1 %v1528_v7  ;;  %v41_v16 = vld [vmem:[%s1732_s4 + $0x30] sm:$0xff]  ;;  %v42_v17 = vld [vmem:[%s1732_s4 + $0x38] sm:$0xff]  ;;  %v340_v19 = vld [vmem:[#allocation5] sm:$0xff] }
  0x18   :  { %1346 = vmatprep.subr.bf16.mxu0 %v1455_v11  ;;  %1341 = vmatpush3.bf16.msra.mxu1 %v1528_v7  ;;  %v333_v24 = vld [vmem:[%s1730_s2] sm:$0xff]  ;;  %v334_v25 = vld [vmem:[%s1730_s2 + $0x8] sm:$0xff]  ;;  %v335_v29 = vld [vmem:[%s1730_s2 + $0x10] sm:$0xff] }
  0x19   :  { %1343 = vmatprep.subr.bf16.mxu1 %v1542_v12  ;;  %v1593_v27 = vpack.c.bf16 %v334_v25, %v333_v24  ;;  %v336_v30 = vld [vmem:[%s1730_s2 + $0x18] sm:$0xff]  ;;  %s1459_s2 = smov [#allocation8]  }
  0x1a   :  { %1213 = vmatmul.mubr.msk.f32.vlgmr.msra.gmra.mrb[0].mxu0 %vm45_vm1, %v36_v6  ;;  %v1606_v32 = vpack.c.bf16 %v336_v30, %v335_v29  ;;  %v1458_v30 = vmov 0   ;;  %s1105_s16 = sshll.u32 %s1459_s2, 4  ;;  %s1106_s16 = int_to_ptr.vmem [resolvable:$true] %s1105_s16 }
  0x1b   :  { %1215 = vmatprep.mubr.msk.f32.mxu0 %vm45_vm1, %v37_v10  ;;  %1348 = vmatpush3.bf16.msra.mxu0 %v1528_v7  ;;  %s1427_s17 = scalar_lea.vmem %s1106_s16, 256  ;;  %p1432_p9 = scmp.lt.s32.totalorder %s1106_s16, %s1106_s16 }
  0x1c   :  { %1349 = vmatprep.subr.bf16.mxu0 %v1455_v11  ;;  %1345 = vmatpush3.bf16.msra.mxu1 %v1542_v12  ;;  %p1428_p8 = scmp.ne.s32.totalorder %s1106_s16, %s1427_s17  ;;  %p1433_p10 = scmp.lt.s32.totalorder %s1427_s17, %s1427_s17 }
  0x1d   :  { %1352 = vmatprep.subr.bf16.mxu1 %v1455_v11  ;;  %1404 = vset.pattern.permute.xlu1 %v1458_v30 }
  0x1e   :  { %1216 = vmatmul.mubr.msk.f32.gmra.mrb[2].mxu0 %vm45_vm1, %v38_v13  ;;  %1403 = vset.pattern.permute.xlu0 %v1458_v30  ;;  %p1434_p11 = por %p1433_p10, %p1432_p9 }
  0x1f   :  { %1218 = vmatprep.mubr.msk.f32.mxu0 %vm45_vm1, %v39_v14  ;;  %1351 = vmatpush3.bf16.msra.mxu0 %v1542_v12 }
  0x20   :  { %1358 = vmatprep.subr.bf16.mxu0 %v1455_v11  ;;  %p1435_p12 = pnand %p1434_p11, %p1428_p8 }
  0x22   :  { %1219 = vmatmul.mubr.msk.f32.gmra.mrb[4].mxu0 %vm45_vm1, %v40_v15 }
  0x23   :  { %1221 = vmatprep.mubr.msk.f32.mxu0 %vm45_vm1, %v41_v16 }
  0x26   :  { %1222 = vmatmul.mubr.msk.f32.gmra.mrb[6].mxu0 %vm45_vm1, %v42_v17 }
  0x27   :  { %1252 = vmatprep.mubr.msk.f32.mxu0 %vm1456_vm4, %v1457_v18 }
  0x2a   :  { %1253 = vmatmul.mubr.msk.f32.vlgmr.msra.gmra.mrb[8].mxu0 %vm179_vm5, %v340_v19 }
  0x2b   :  { %1360 = vmatpush3.bf16.msra.mxu0 %v1528_v7  ;;  %1274 = vmatprep.mubr.msk.f32.mxu0 %vm1456_vm4, %v1457_v18 }
  0x2c   :  { %1361 = vmatprep.subr.bf16.mxu0 %v1455_v11 }
  0x2f   :  { %1363 = vmatpush3.bf16.msra.mxu0 %v1542_v12 }
  0x30   :  { %1370 = vmatprep.subr.bf16.mxu0 %v1455_v11 }
  0xed   :  { %v1214_v26 = vpop.f32.mrb[0].mxu0 }
  0xee   :  { %181 = vst.msk [vmem:[#allocation2 + $0x8] sm:$0xff] %vm179_vm5, %v1214_v26  ;;  %v140_v28 = vpop.f32.mrb[1].mxu0 }
  0xef   :  { %180 = vst.msk [vmem:[#allocation2] sm:$0xff] %vm179_vm5, %v140_v28  ;;  %1232 = vmatprep.mubr.msk.f32.mxu1 %vm179_vm5, %v140_v28 }
  0xf0   :  { %1233 = vmatmul.mubr.msk.f32.vlgmr.msra.gmra.mrb[0].mxu1 %vm179_vm5, %v1214_v26 }
  0xf1   :  { %1354 = vmatpush3.bf16.msra.mxu1 %v1593_v27  ;;  %v1217_v31 = vpop.f32.mrb[2].mxu0 }
  0xf2   :  { %183 = vst.msk [vmem:[#allocation2 + $0x18] sm:$0xff] %vm179_vm5, %v1217_v31  ;;  %v150_v33 = vpop.f32.mrb[3].mxu0  ;;  %1355 = vmatprep.subr.bf16.mxu1 %v1455_v11 }
  0xf3   :  { %182 = vst.msk [vmem:[#allocation2 + $0x10] sm:$0xff] %vm179_vm5, %v150_v33  ;;  %1235 = vmatprep.mubr.msk.f32.mxu1 %vm179_vm5, %v150_v33 }
  0xf4   :  { %1236 = vmatmul.mubr.msk.f32.gmra.mrb[2].mxu1 %vm179_vm5, %v1217_v31 }
  0xf5   :  { %v1220_v34 = vpop.f32.mrb[4].mxu0  ;;  %1357 = vmatpush3.bf16.msra.mxu1 %v1606_v32  ;;  %v343_v54 = vld [vmem:[#allocation2 + $0x8] sm:$0xff] }
  0xf6   :  { %185 = vst.msk [vmem:[#allocation2 + $0x28] sm:$0xff] %vm179_vm5, %v1220_v34  ;;  %v160_v35 = vpop.f32.mrb[5].mxu0  ;;  %1364 = vmatprep.subr.bf16.mxu1 %v1455_v11  ;;  %v341_v38 = vld [vmem:[#allocation2] sm:$0xff] }
  0xf7   :  { %184 = vst.msk [vmem:[#allocation2 + $0x20] sm:$0xff] %vm179_vm5, %v160_v35  ;;  %1238 = vmatprep.mubr.msk.f32.mxu1 %vm179_vm5, %v160_v35 }
  0xf8   :  { %1239 = vmatmul.mubr.msk.f32.gmra.mrb[4].mxu1 %vm179_vm5, %v1220_v34 }
  0xf9   :  { %v1223_v36 = vpop.f32.mrb[6].mxu0  ;;  %v508_v63 = vld [vmem:[#allocation2 + $0x18] sm:$0xff] }
  0xfa   :  { %187 = vst.msk [vmem:[#allocation2 + $0x38] sm:$0xff] %vm179_vm5, %v1223_v36  ;;  %v170_v37 = vpop.f32.mrb[7].mxu0  ;;  %v506_v1 = vld [vmem:[#allocation2 + $0x10] sm:$0xff] }
  0xfb   :  { %186 = vst.msk [vmem:[#allocation2 + $0x30] sm:$0xff] %vm179_vm5, %v170_v37  ;;  %1241 = vmatprep.mubr.msk.f32.mxu1 %vm179_vm5, %v170_v37 }
  0xfc   :  { %1242 = vmatmul.mubr.msk.f32.gmra.mrb[6].mxu1 %vm179_vm5, %v1223_v36 }
  0xfd   :  { %v414_v39 = vpop.f32.mrb[8].mxu0  ;;  %1263 = vmatprep.mubr.msk.f32.mxu1 %vm1456_vm4, %v1457_v18  ;;  %v674_v16 = vld [vmem:[#allocation2 + $0x28] sm:$0xff] }
  0xfe   :  { %v415_v40 = vadd.f32 %v414_v39, %v341_v38  ;;  %v1254_v41 = vpop.f32.mrb[9].mxu0 }
 0x100   :  { %490 = vst.msk [vmem:[#allocation8] sm:$0x3] %vm489_vm6, %v415_v40  ;;  %1264 = vmatmul.mubr.msk.f32.vlgmr.msra.gmra.mrb[8].mxu1 %vm179_vm5, %v340_v19  ;;  %v491_v42 = vsel %vm339_vm7, %v415_v40, 0.0  ;;  %v672_v19 = vld [vmem:[#allocation2 + $0x20] sm:$0xff] }
 0x101   :  { %v492_v43 = vsel %vm179_vm5, %v491_v42, 0.0  ;;  %1366 = vmatpush3.bf16.msra.mxu1 %v1593_v27  ;;  %1285 = vmatprep.mubr.msk.f32.mxu1 %vm1456_vm4, %v1457_v18  ;;  %v840_v34 = vld [vmem:[#allocation2 + $0x38] sm:$0xff] }
 0x102   :  { %493 = vadd.xlane.f32.xlu0 %v492_v43  ;;  %1367 = vmatprep.subr.bf16.mxu1 %v1455_v11  ;;  %v838_v36 = vld [vmem:[#allocation2 + $0x30] sm:$0xff] }
 0x105   :  { %1369 = vmatpush3.bf16.msra.mxu1 %v1606_v32 }
 0x106   :  { %1376 = vmatprep.subr.bf16.mxu1 %v1455_v11 }
 0x18f   :  { %v494_v44 = vpop.xlane.xlu0 %493 }
 0x190   :  { %496 = vst.msk [vmem:[#allocation4] sm:$0xff] %vm495_vm8, %v494_v44 }
 0x1c3   :  { %v1234_v45 = vpop.f32.mrb[0].mxu1 }
 0x1c4   :  { %v282_v46 = vpop.f32.mrb[1].mxu1 }
 0x1c5   :  { %321 = vst.msk [vmem:[#allocation3] sm:$0xff] %vm179_vm5, %v282_v46 }
 0x1c7   :  { %v1237_v47 = vpop.f32.mrb[2].mxu1 }
 0x1c8   :  { %v292_v48 = vpop.f32.mrb[3].mxu1 }
 0x1c9   :  { %323 = vst.msk [vmem:[#allocation3 + $0x10] sm:$0xff] %vm179_vm5, %v292_v48 }
 0x1cb   :  { %v1240_v49 = vpop.f32.mrb[4].mxu1 }
 0x1cc   :  { %v302_v50 = vpop.f32.mrb[5].mxu1  ;;  %v344_v52 = vld [vmem:[#allocation3] sm:$0xff] }
 0x1cd   :  { %325 = vst.msk [vmem:[#allocation3 + $0x20] sm:$0xff] %vm179_vm5, %v302_v50  ;;  %v418_v55 = vadd.f32 %v344_v52, %v343_v54  ;;  %v1003_v49 = vld [vmem:[#allocation4] sm:$0xff] }
 0x1cf   :  { %v1243_v51 = vpop.f32.mrb[6].mxu1 }
 0x1d0   :  { %v312_v53 = vpop.f32.mrb[7].mxu1  ;;  %v510_v62 = vld [vmem:[#allocation3 + $0x10] sm:$0xff] }
 0x1d1   :  { %327 = vst.msk [vmem:[#allocation3 + $0x30] sm:$0xff] %vm179_vm5, %v312_v53  ;;  %v584_v0 = vadd.f32 %v510_v62, %v508_v63 }
 0x1d3   :  { %v485_v56 = vpop.f32.mrb[8].mxu1 }
 0x1d4   :  { %v486_v57 = vadd.f32 %v485_v56, %v418_v55  ;;  %v1265_v58 = vpop.f32.mrb[9].mxu1 }
 0x1d6   :  { %498 = vst.msk [vmem:[#allocation8 + $0x2] sm:$0x3] %vm489_vm6, %v486_v57  ;;  %1275 = vmatmul.mubr.msk.f32.vlgmr.msra.gmra.mrb[10].mxu0 %vm179_vm5, %v486_v57  ;;  %1286 = vmatmul.mubr.msk.f32.vlgmr.msra.gmra.mrb[10].mxu1 %vm179_vm5, %v486_v57  ;;  %v499_v59 = vsel %vm339_vm7, %v486_v57, 0.0 }
 0x1d7   :  { %v500_v60 = vsel %vm179_vm5, %v499_v59, 0.0  ;;  %1372 = vmatpush3.bf16.msra.mxu0 %v1528_v7  ;;  %1378 = vmatpush3.bf16.msra.mxu1 %v1593_v27 }
 0x1d8   :  { %501 = vadd.xlane.f32.xlu0 %v500_v60  ;;  %1373 = vmatprep.subr.bf16.mxu0 %v1455_v11  ;;  %v842_v33 = vld [vmem:[#allocation3 + $0x30] sm:$0xff] }
 0x1d9   :  { %1379 = vmatprep.subr.bf16.mxu1 %v1455_v11  ;;  %1296 = vmatprep.mubr.msk.f32.mxu0 %vm1456_vm4, %v1457_v18  ;;  %v916_v35 = vadd.f32 %v842_v33, %v840_v34 }
 0x1da   :  { %1307 = vmatprep.mubr.msk.f32.mxu1 %vm1456_vm4, %v1457_v18 }
 0x1db   :  { %1375 = vmatpush3.bf16.msra.mxu0 %v1542_v12  ;;  %1381 = vmatpush3.bf16.msra.mxu1 %v1606_v32 }
 0x1dc   :  { %1382 = vmatprep.subr.bf16.mxu0 %v1455_v11  ;;  %1388 = vmatprep.subr.bf16.mxu1 %v1455_v11 }
 0x265   :  { %v502_v61 = vpop.xlane.xlu0 %501 }
 0x266   :  { %504 = vst.msk [vmem:[#allocation4 + $0x8] sm:$0xff] %vm495_vm8, %v502_v61 }
 0x26d   :  { %v1004_v47 = vld [vmem:[#allocation4 + $0x8] sm:$0xff] }
 0x2a9   :  { %v580_v2 = vpop.f32.mrb[10].mxu0  ;;  %v651_v3 = vpop.f32.mrb[10].mxu1 }
 0x2aa   :  { %v581_v4 = vadd.f32 %v580_v2, %v506_v1  ;;  %v652_v5 = vadd.f32 %v651_v3, %v584_v0  ;;  %v1276_v6 = vpop.f32.mrb[11].mxu0  ;;  %v1287_v8 = vpop.f32.mrb[11].mxu1 }
 0x2ac   :  { %656 = vst.msk [vmem:[#allocation8 + $0x4] sm:$0x3] %vm489_vm6, %v581_v4  ;;  %664 = vst.msk [vmem:[#allocation8 + $0x6] sm:$0x3] %vm489_vm6, %v652_v5  ;;  %1297 = vmatmul.mubr.msk.f32.vlgmr.msra.gmra.mrb[12].mxu0 %vm179_vm5, %v652_v5  ;;  %1308 = vmatmul.mubr.msk.f32.vlgmr.msra.gmra.mrb[12].mxu1 %vm179_vm5, %v652_v5  ;;  %v657_v9 = vsel %vm339_vm7, %v581_v4, 0.0  ;;  %v665_v13 = vsel %vm339_vm7, %v652_v5, 0.0 }
 0x2ad   :  { %v658_v10 = vsel %vm179_vm5, %v657_v9, 0.0  ;;  %1384 = vmatpush3.bf16.msra.mxu0 %v1528_v7  ;;  %1390 = vmatpush3.bf16.msra.mxu1 %v1593_v27  ;;  %v666_v14 = vsel %vm179_vm5, %v665_v13, 0.0 }
 0x2ae   :  { %659 = vadd.xlane.f32.xlu1 %v658_v10  ;;  %1385 = vmatprep.subr.bf16.mxu0 %v1455_v11 }
 0x2af   :  { %1391 = vmatprep.subr.bf16.mxu1 %v1455_v11  ;;  %1318 = vmatprep.mubr.msk.f32.mxu0 %vm1456_vm4, %v1457_v18  ;;  %v676_v11 = vld [vmem:[#allocation3 + $0x20] sm:$0xff] }
 0x2b0   :  { %1329 = vmatprep.mubr.msk.f32.mxu1 %vm1456_vm4, %v1457_v18  ;;  %v750_v17 = vadd.f32 %v676_v11, %v674_v16 }
 0x2b1   :  { %1387 = vmatpush3.bf16.msra.mxu0 %v1542_v12  ;;  %1393 = vmatpush3.bf16.msra.mxu1 %v1606_v32 }
 0x2b2   :  { %667 = vadd.xlane.f32.xlu1 %v666_v14 }
 0x33b   :  { %v660_v7 = vpop.xlane.xlu1 %659 }
 0x33c   :  { %662 = vst.msk [vmem:[#allocation4 + $0x10] sm:$0xff] %vm495_vm8, %v660_v7 }
 0x33f   :  { %v668_v15 = vpop.xlane.xlu1 %667 }
 0x340   :  { %670 = vst.msk [vmem:[#allocation4 + $0x18] sm:$0xff] %vm495_vm8, %v668_v15 }
 0x343   :  { %v1005_v48 = vld [vmem:[#allocation4 + $0x10] sm:$0xff] }
 0x347   :  { %v1006_v50 = vld [vmem:[#allocation4 + $0x18] sm:$0xff] }
 0x37f   :  { %v746_v20 = vpop.f32.mrb[12].mxu0  ;;  %v817_v22 = vpop.f32.mrb[12].mxu1 }
 0x380   :  { %v747_v18 = vadd.f32 %v746_v20, %v672_v19  ;;  %v818_v24 = vadd.f32 %v817_v22, %v750_v17  ;;  %v1298_v25 = vpop.f32.mrb[13].mxu0  ;;  %v1309_v26 = vpop.f32.mrb[13].mxu1 }
 0x382   :  { %822 = vst.msk [vmem:[#allocation8 + $0x8] sm:$0x3] %vm489_vm6, %v747_v18  ;;  %830 = vst.msk [vmem:[#allocation8 + $0xa] sm:$0x3] %vm489_vm6, %v818_v24  ;;  %1319 = vmatmul.mubr.msk.f32.vlgmr.msra.gmra.mrb[14].mxu0 %vm179_vm5, %v818_v24  ;;  %1330 = vmatmul.mubr.msk.f32.vlgmr.msra.gmra.mrb[14].mxu1 %vm179_vm5, %v818_v24  ;;  %v823_v12 = vsel %vm339_vm7, %v747_v18, 0.0  ;;  %v831_v27 = vsel %vm339_vm7, %v818_v24, 0.0 }
 0x383   :  { %v824_v28 = vsel %vm179_vm5, %v823_v12, 0.0  ;;  %v832_v29 = vsel %vm179_vm5, %v831_v27, 0.0 }
 0x384   :  { %825 = vadd.xlane.f32.xlu0 %v824_v28  ;;  %833 = vadd.xlane.f32.xlu1 %v832_v29 }
 0x411   :  { %v826_v31 = vpop.xlane.xlu0 %825  ;;  %v834_v32 = vpop.xlane.xlu1 %833 }
 0x412   :  { %828 = vst.msk [vmem:[#allocation4 + $0x20] sm:$0xff] %vm495_vm8, %v826_v31  ;;  %836 = vst.msk [vmem:[#allocation4 + $0x28] sm:$0xff] %vm495_vm8, %v834_v32 }
 0x419   :  { %v1007_v51 = vld [vmem:[#allocation4 + $0x20] sm:$0xff]  ;;  %v1008_v52 = vld [vmem:[#allocation4 + $0x28] sm:$0xff] }
 0x455   :  { %v912_v37 = vpop.f32.mrb[14].mxu0  ;;  %v983_v38 = vpop.f32.mrb[14].mxu1 }
 0x456   :  { %v913_v39 = vadd.f32 %v912_v37, %v838_v36  ;;  %v984_v40 = vadd.f32 %v983_v38, %v916_v35  ;;  %v1320_v41 = vpop.f32.mrb[15].mxu0  ;;  %v1331_v42 = vpop.f32.mrb[15].mxu1 }
 0x458   :  { %988 = vst.msk [vmem:[#allocation8 + $0xc] sm:$0x3] %vm489_vm6, %v913_v39  ;;  %996 = vst.msk [vmem:[#allocation8 + $0xe] sm:$0x3] %vm489_vm6, %v984_v40  ;;  %v997_v43 = vsel %vm339_vm7, %v984_v40, 0.0  ;;  %v989_v44 = vsel %vm339_vm7, %v913_v39, 0.0 }
 0x459   :  { %v998_v45 = vsel %vm179_vm5, %v997_v43, 0.0  ;;  %v990_v46 = vsel %vm179_vm5, %v989_v44, 0.0 }
 0x45a   :  { %999 = vadd.xlane.f32.xlu1 %v998_v45  ;;  %991 = vadd.xlane.f32.xlu0 %v990_v46 }
 0x46b   :  { %1031 = vperm.xlu1 %1404, %v1004_v47  }
 0x46f   :  { %1034 = vperm.xlu1 %1404, %v1005_v48  }
 0x470   :  { %1028 = vperm.xlu0 %1403, %v1003_v49  }
 0x473   :  { %1037 = vperm.xlu1 %1404, %v1006_v50  }
 0x477   :  { %1040 = vperm.xlu1 %1404, %v1007_v51  }
 0x47b   :  { %1043 = vperm.xlu1 %1404, %v1008_v52  }
 0x4e7   :  { %v1000_v21 = vpop.xlane.xlu1 %999  ;;  %v992_v53 = vpop.xlane.xlu0 %991 }
 0x4e8   :  { %1002 = vst.msk [vmem:[#allocation4 + $0x38] sm:$0xff] %vm495_vm8, %v1000_v21  ;;  %994 = vst.msk [vmem:[#allocation4 + $0x30] sm:$0xff] %vm495_vm8, %v992_v53 }
 0x4ef   :  { %v1009_v54 = vld [vmem:[#allocation4 + $0x30] sm:$0xff]  ;;  %v1010_v55 = vld [vmem:[#allocation4 + $0x38] sm:$0xff] }
 0x4f0   :  { %1046 = vperm.xlu1 %1404, %v1009_v54  }
 0x4f4   :  { %1049 = vperm.xlu1 %1404, %v1010_v55  }
 0x4f5   :  { %1438 = shalt.err (!%p1435_p12)
}
 0x4f6   :  { %s1439_s3 = scalar_lea.hbm %s1733_s5, 256 }
 0x4f7   :  { %p1440_p13 = scmp.ne.s32.totalorder %s1733_s5, %s1439_s3  ;;  %p1443_p0 = scmp.lt.u32.totalorder %s1439_s3, %s1733_s5 }
 0x4f9   :  { %p1445_p1 = pnand %p1443_p0, %p1440_p13 }
 0x4fb   :  { %1448 = shalt.err (!%p1445_p1)
}
 0x4fc   :  { %s1460_s24 = smov 32   ;;  %s1461_s25 = smov 2   ;;  %v1032_v56 = vpop.permute.xlu1 %1031  ;;  %v1029_v60 = vpop.permute.xlu0 %1028  ;;  %vm1083_vm9 = vcmask 1041409   ;;  %vm1085_vm10 = vcmask 1042434   ;;  %vm1087_vm11 = vcmask 1043459   ;;  %vm1089_vm12 = vcmask 1044484  }
 0x4fd   :  { %1111 = dma.vmem_to_hbm [thread:$0]  %s1106_s16, 256, %s1733_s5, [#allocation7], %s1460_s24, %s1460_s24, %s1461_s25   ;;  %v1054_v61 = vrot.slane %v1029_v60, %v1585_v23  ;;  %v1058_v63 = vrot.slane %v1032_v56, %v1585_v23  ;;  %vm1091_vm13 = vcmask 1045509   ;;  %vm1093_vm14 = vcmask 1046534  }
 0x4fe   :  { %vm1095_vm15 = vcmask 1047559   ;;  %vm1098_vm0 = vcmask 15360  }
 0x4ff   :  { %v1084_v1 = vsel %vm1083_vm9, %v1058_v63, %v1054_v61 }
 0x500   :  { %v1035_v57 = vpop.permute.xlu1 %1034 }
 0x501   :  { %v1062_v0 = vrot.slane %v1035_v57, %v1585_v23 }
 0x503   :  { %v1086_v6 = vsel %vm1085_vm10, %v1062_v0, %v1084_v1 }
 0x504   :  { %v1038_v58 = vpop.permute.xlu1 %1037 }
 0x505   :  { %v1066_v2 = vrot.slane %v1038_v58, %v1585_v23 }
 0x507   :  { %v1088_v9 = vsel %vm1087_vm11, %v1066_v2, %v1086_v6 }
 0x508   :  { %v1041_v59 = vpop.permute.xlu1 %1040 }
 0x509   :  { %v1070_v3 = vrot.slane %v1041_v59, %v1585_v23 }
 0x50b   :  { %v1090_v10 = vsel %vm1089_vm12, %v1070_v3, %v1088_v9 }
 0x50c   :  { %v1044_v62 = vpop.permute.xlu1 %1043 }
 0x50d   :  { %v1074_v5 = vrot.slane %v1044_v62, %v1585_v23 }
 0x50f   :  { %v1092_v14 = vsel %vm1091_vm13, %v1074_v5, %v1090_v10 }
 0x56f   :  { %v1047_v4 = vpop.permute.xlu1 %1046 }
 0x570   :  { %v1078_v8 = vrot.slane %v1047_v4, %v1585_v23 }
 0x572   :  { %v1094_v15 = vsel %vm1093_vm14, %v1078_v8, %v1092_v14 }
 0x573   :  { %v1050_v13 = vpop.permute.xlu1 %1049 }
 0x574   :  { %v1082_v7 = vrot.slane %v1050_v13, %v1585_v23 }
 0x576   :  { %v1096_v11 = vsel %vm1095_vm15, %v1082_v7, %v1094_v15 }
 0x577   :  { %1099 = vst.msk [vmem:[%s1734_s6] sm:$0xff] %vm1098_vm0, %v1096_v11 }
 0x578   :  { %1451 = dma.done.wait [#allocation7], 256  }
 0x579   :  { %1452 = vsyncadd [#allocation7], 4294967040 }
 0x57a   :  { %1119 = vsyncpa [#allocation6], 1 }
 0x57b   :  { %1120 = vsyncpa [#allocation7], 1 }

</bundles_post_ra>
